<compile_context>
chip_gen: v7x
topology: tpu7x:2x2x1
jax: 0.10.0
libtpu: 0.0.40
codegen_flags: <defaults>
</compile_context>

<pallas_src>
import jax
import jax.numpy as jnp
from jax import lax
from jax.experimental import pallas as pl
from jax.experimental.pallas import tpu as pltpu

STATE_DIM = 4
HIDDEN = 96
HIDDEN2 = HIDDEN // 2  # 48
BN_EPS = 1e-5

LANE = 128
CHUNK_LANES = 512        # in-kernel lane slab; keeps per-slab h1/h2 tiny
TB_MAX_DEFAULT = 16384   # max batch lanes per grid step (multiple of CHUNK_LANES)


def _cdiv(a, b):
    return -(-a // b)


def _round_up(n, m):
    return _cdiv(n, m) * m


def _pick_chunk(tb):
    """Largest lane-slab (multiple of 128) that divides the tile."""
    for c in (CHUNK_LANES, 256, LANE):
        if tb >= c and tb % c == 0:
            return c
    return tb


def _select_tiling(B, tb_max):
    """Pad-aware tile selection: bounds final-tile waste to <128 lanes and
    keeps >=2 grid steps for moderate B (v7x megacore)."""
    assert tb_max % LANE == 0 and tb_max >= LANE
    b_lanes = _round_up(max(B, 1), LANE)
    n_tiles = _cdiv(b_lanes, tb_max)
    if b_lanes >= 2 * LANE:
        n_tiles = max(n_tiles, 2)      # engage both TensorCores on v7x
    tb = _round_up(_cdiv(b_lanes, n_tiles), LANE)
    assert tb % LANE == 0 and LANE <= tb <= tb_max
    chunk = _pick_chunk(tb)
    assert chunk % LANE == 0 and tb % chunk == 0
    return n_tiles, tb, chunk


def _vmem_limit_bytes(tb, chunk):
    est = (2 * 16 * tb * 2                    # double-buffered x tile (bf16, sublane-padded)
           + 2 * 8 * tb * 4                   # double-buffered out tile (f32, sublane-padded)
           + (HIDDEN + HIDDEN2) * chunk * 6   # per-slab h1/h2 (f32 + bf16 copies)
           + (1 << 20))                       # folded weights/biases + compiler scratch
    return int(min(48 << 20, max(16 << 20, 4 * est)))


def _make_reward_kernel(chunk):
    def _reward_kernel(x_ref,                      # [STATE_DIM, TB] bf16
                       w1_ref, b1_ref,             # [96, 4] bf16, [96, 1] f32
                       w2_ref, b2_ref,             # [48, 96] bf16, [48, 1] f32  (BN1 folded)
                       w3_ref, b3_ref,             # [1, 48]  bf16, [1, 1]  f32  (BN2 folded)
                       o_ref):                     # [1, TB] f32
        # Weights/biases are VMEM-resident across the whole grid (constant
        # index_map); load once per grid step.
        w1 = w1_ref[...]
        b1 = b1_ref[...]
        w2 = w2_ref[...]
        b2 = b2_ref[...]
        w3 = w3_ref[...]
        b3 = b3_ref[...]

        n_chunks = o_ref.shape[1] // chunk

        def body(c, carry):
            j = pl.multiple_of(c * chunk, chunk)
            xs = x_ref[:, pl.ds(j, chunk)]                           # [4, chunk] bf16

            # Layer 1: Linear(4 -> 96) + ReLU
            h1 = jnp.dot(w1, xs, preferred_element_type=jnp.float32)
            h1 = jnp.maximum(h1 + b1, 0.0).astype(jnp.bfloat16)      # [96, chunk]

            # Layer 2: Linear(96 -> 48) + ReLU (BN1 folded)
            h2 = jnp.dot(w2, h1, preferred_element_type=jnp.float32)
            h2 = jnp.maximum(h2 + b2, 0.0).astype(jnp.bfloat16)      # [48, chunk]

            # Layer 3: Linear(48 -> 1) (BN2 folded)
            r = jnp.dot(w3, h2, preferred_element_type=jnp.float32)  # [1, chunk]
            o_ref[:, pl.ds(j, chunk)] = (r + b3).astype(o_ref.dtype)
            return carry

        lax.fori_loop(0, n_chunks, body, 0)

    return _reward_kernel


def _bn_scale_shift(gamma, beta, running_mean, running_var):
    scale = gamma / jnp.sqrt(running_var + BN_EPS)
    shift = beta - running_mean * scale
    return scale, shift


def prepare_params(params):
    """One-time (offline) BN fold + transpose + bf16 cast of the weights."""
    w1, b1, w2, b2, w3, b3, bn1, bn2 = params
    s1, t1 = _bn_scale_shift(*bn1)             # (96,), (96,)
    s2, t2 = _bn_scale_shift(*bn2)             # (48,), (48,)
    w2f = w2 * s1[:, None]                     # [96, 48]
    b2f = b2 + t1 @ w2                         # (48,)
    w3f = w3 * s2[:, None]                     # [48, 1]
    b3f = b3 + t2 @ w3                         # (1,)
    return dict(
        w1t=w1.T.astype(jnp.bfloat16),                          # [96, 4]
        b1c=b1.reshape(HIDDEN, 1).astype(jnp.float32),
        w2t=w2f.T.astype(jnp.bfloat16),                         # [48, 96]
        b2c=b2f.reshape(HIDDEN2, 1).astype(jnp.float32),
        w3t=w3f.T.astype(jnp.bfloat16),                         # [1, 48]
        b3c=b3f.reshape(1, 1).astype(jnp.float32),
    )


def reward_model_forward(x, prep, *, tb_max=TB_MAX_DEFAULT):
    """x: [B, STATE_DIM] float32 -> [B, 1] float32 (eval-mode forward)."""
    B = x.shape[0]
    n_tiles, tb, chunk = _select_tiling(B, tb_max)
    B_pad = n_tiles * tb

    # Fused transpose + pad + bf16 downcast (single XLA fusion pass).
    # TODO(synk): accept/store x feature-major [STATE_DIM, B] upstream to
    # remove this relayout pass entirely.
    xt = jnp.pad(x.T.astype(jnp.bfloat16), ((0, 0), (0, B_pad - B)))

    out = pl.pallas_call(
        _make_reward_kernel(chunk),
        out_shape=jax.ShapeDtypeStruct((1, B_pad), jnp.float32),
        grid_spec=pltpu.PrefetchScalarGridSpec(
            num_scalar_prefetch=0,
            grid=(n_tiles,),
            in_specs=[
                # x tile marches along the lane (batch) axis with the grid.
                pl.BlockSpec((STATE_DIM, tb), lambda i: (0, i)),
                # weights / biases: constant index_map -> VMEM-resident.
                pl.BlockSpec((HIDDEN, STATE_DIM), lambda i: (0, 0)),
                pl.BlockSpec((HIDDEN, 1), lambda i: (0, 0)),
                pl.BlockSpec((HIDDEN2, HIDDEN), lambda i: (0, 0)),
                pl.BlockSpec((HIDDEN2, 1), lambda i: (0, 0)),
                pl.BlockSpec((1, HIDDEN2), lambda i: (0, 0)),
                pl.BlockSpec((1, 1), lambda i: (0, 0)),
            ],
            out_specs=pl.BlockSpec((1, tb), lambda i: (0, i)),
        ),
        compiler_params=pltpu.CompilerParams(
            dimension_semantics=("parallel",),          # megacore-shardable on v7x
            vmem_limit_bytes=_vmem_limit_bytes(tb, chunk),
        ),
    )(xt, prep["w1t"], prep["b1c"], prep["w2t"], prep["b2c"],
      prep["w3t"], prep["b3c"])

    return out[0, :B].reshape(B, 1)


def init_params(key):
    """Matches SimplifiedRewardModel._init_weights:
       Linear: xavier_normal_(gain=0.5), bias 0 (or -0.02 when out_features==1).
       BatchNorm1d: gamma=1, beta=0, running_mean=0, running_var=1 (fresh)."""
    k1, k2, k3 = jax.random.split(key, 3)

    def xavier_normal(k, fan_in, fan_out, gain=0.5):
        std = gain * jnp.sqrt(2.0 / (fan_in + fan_out))
        # torch stores weight as [out, in]; we store transposed [in, out]
        return std * jax.random.normal(k, (fan_in, fan_out), jnp.float32)

    w1 = xavier_normal(k1, STATE_DIM, HIDDEN)
    b1 = jnp.zeros((HIDDEN,), jnp.float32)
    w2 = xavier_normal(k2, HIDDEN, HIDDEN2)
    b2 = jnp.zeros((HIDDEN2,), jnp.float32)
    w3 = xavier_normal(k3, HIDDEN2, 1)
    b3 = jnp.full((1,), -0.02, jnp.float32)

    def bn_params(n):
        return (jnp.ones((n,), jnp.float32),    # gamma
                jnp.zeros((n,), jnp.float32),   # beta
                jnp.zeros((n,), jnp.float32),   # running_mean
                jnp.ones((n,), jnp.float32))    # running_var

    return (w1, b1, w2, b2, w3, b3, bn_params(HIDDEN), bn_params(HIDDEN2))


def reference_forward(x, params):
    """Pure-JAX f32 reference of the PyTorch eval-mode forward (unfolded BN)."""
    w1, b1, w2, b2, w3, b3, bn1, bn2 = params
    s1, t1 = _bn_scale_shift(*bn1)
    s2, t2 = _bn_scale_shift(*bn2)
    h1 = jnp.maximum(x @ w1 + b1, 0.0) * s1 + t1
    h2 = jnp.maximum(h1 @ w2 + b2, 0.0) * s2 + t2
    return h2 @ w3 + b3


if __name__ == "__main__":
    key = jax.random.PRNGKey(0)
    k_params, k_x1, k_x2 = jax.random.split(key, 3)

    params = init_params(k_params)
    prep = prepare_params(params)            # BN fold / transposes hoisted: once

    fwd = jax.jit(reward_model_forward)

    # Two shapes: a tiny single-tile batch, and one exercising the 2-tile grid
    # (v7x megacore path) and the in-kernel lane-chunk loop.
    for B, kx in ((8, k_x1), (300, k_x2)):
        x = jax.random.normal(kx, (B, STATE_DIM), jnp.float32)
        out = jax.block_until_ready(fwd(x, prep))
        ref = reference_forward(x, params)
        assert out.shape == (B, 1)
        # bf16 matmul operands (f32 accumulation) vs the f32 reference:
        # measured error is ~1e-3; tolerance gives comfortable margin.
        assert jnp.allclose(out, ref, atol=1e-2, rtol=1e-2), (
            f"mismatch vs reference at B={B}: "
            f"max|diff|={float(jnp.max(jnp.abs(out - ref)))}")

    print("KERNEL_OK")
</pallas_src>

<mosaic_0001>
module attributes {stable_mosaic.version = 11 : i64} {
  func.func @_reward_kernel(%arg0: i32, %arg1: memref<4x128xbf16, #tpu.memory_space<vmem>>, %arg2: memref<96x4xbf16, #tpu.memory_space<vmem>>, %arg3: memref<96x1xf32, #tpu.memory_space<vmem>>, %arg4: memref<48x96xbf16, #tpu.memory_space<vmem>>, %arg5: memref<48x1xf32, #tpu.memory_space<vmem>>, %arg6: memref<1x48xbf16, #tpu.memory_space<vmem>>, %arg7: memref<1x1xf32, #tpu.memory_space<vmem>>, %arg8: memref<1x128xf32, #tpu.memory_space<vmem>>) attributes {dimension_semantics = [#tpu.dimension_semantics<parallel>], iteration_bounds = array<i64: 1>, scalar_prefetch = 0 : i64, scratch_operands = 0 : i64, tpu.core_type = #tpu.core_type<tc>, window_params = [{transform_indices = @transform_0, window_bounds = array<i64: 4, 128>}, {pipeline_mode = #tpu.pipeline_mode<synchronous>, transform_indices = @transform_1, window_bounds = array<i64: 96, 4>}, {pipeline_mode = #tpu.pipeline_mode<synchronous>, transform_indices = @transform_2, window_bounds = array<i64: 96, 1>}, {pipeline_mode = #tpu.pipeline_mode<synchronous>, transform_indices = @transform_3, window_bounds = array<i64: 48, 96>}, {pipeline_mode = #tpu.pipeline_mode<synchronous>, transform_indices = @transform_4, window_bounds = array<i64: 48, 1>}, {pipeline_mode = #tpu.pipeline_mode<synchronous>, transform_indices = @transform_5, window_bounds = array<i64: 1, 48>}, {pipeline_mode = #tpu.pipeline_mode<synchronous>, transform_indices = @transform_6, window_bounds = array<i64: 1, 1>}, {transform_indices = @transform_7, window_bounds = array<i64: 1, 128>}]} {
    %c0 = arith.constant 0 : index
    %c0_0 = arith.constant 0 : index
    %0 = vector.load %arg2[%c0, %c0_0] : memref<96x4xbf16, #tpu.memory_space<vmem>>, vector<96x4xbf16>
    %c0_1 = arith.constant 0 : index
    %c0_2 = arith.constant 0 : index
    %1 = vector.load %arg3[%c0_1, %c0_2] : memref<96x1xf32, #tpu.memory_space<vmem>>, vector<96x1xf32>
    %c0_3 = arith.constant 0 : index
    %c0_4 = arith.constant 0 : index
    %2 = vector.load %arg4[%c0_3, %c0_4] : memref<48x96xbf16, #tpu.memory_space<vmem>>, vector<48x96xbf16>
    %c0_5 = arith.constant 0 : index
    %c0_6 = arith.constant 0 : index
    %3 = vector.load %arg5[%c0_5, %c0_6] : memref<48x1xf32, #tpu.memory_space<vmem>>, vector<48x1xf32>
    %c0_7 = arith.constant 0 : index
    %c0_8 = arith.constant 0 : index
    %4 = vector.load %arg6[%c0_7, %c0_8] : memref<1x48xbf16, #tpu.memory_space<vmem>>, vector<1x48xbf16>
    %c0_9 = arith.constant 0 : index
    %c0_10 = arith.constant 0 : index
    %5 = vector.load %arg7[%c0_9, %c0_10] : memref<1x1xf32, #tpu.memory_space<vmem>>, vector<1x1xf32>
    %c0_i32 = arith.constant 0 : i32
    %c128_i32 = arith.constant 128 : i32
    %6 = arith.muli %c0_i32, %c128_i32 : i32
    %7 = tpu.assume_multiple %6, 128 : i32
    %c0_11 = arith.constant 0 : index
    %8 = arith.index_cast %7 : i32 to index
    %9 = vector.load %arg1[%c0_11, %8] : memref<4x128xbf16, #tpu.memory_space<vmem>>, vector<4x128xbf16>
    %cst = arith.constant dense<0.000000e+00> : vector<96x128xf32>
    %10 = tpu.matmul %0, %9, %cst {dimension_numbers = #tpu.dot_dimension_numbers<[1], [0], [0], [1], [0, 0, 1, 1], [], []>} : vector<96x4xbf16>, vector<4x128xbf16>, vector<96x128xf32> -> vector<96x128xf32>
    %11 = vector.broadcast %1 : vector<96x1xf32> to vector<96x128xf32>
    %12 = arith.addf %10, %11 : vector<96x128xf32>
    %cst_12 = arith.constant 0.000000e+00 : f32
    %13 = vector.broadcast %cst_12 : f32 to vector<96x128xf32>
    %14 = arith.maximumf %12, %13 : vector<96x128xf32>
    %15 = arith.truncf %14 : vector<96x128xf32> to vector<96x128xbf16>
    %cst_13 = arith.constant dense<0.000000e+00> : vector<48x128xf32>
    %16 = tpu.matmul %2, %15, %cst_13 {dimension_numbers = #tpu.dot_dimension_numbers<[1], [0], [0], [1], [0, 0, 1, 1], [], []>} : vector<48x96xbf16>, vector<96x128xbf16>, vector<48x128xf32> -> vector<48x128xf32>
    %17 = vector.broadcast %3 : vector<48x1xf32> to vector<48x128xf32>
    %18 = arith.addf %16, %17 : vector<48x128xf32>
    %cst_14 = arith.constant 0.000000e+00 : f32
    %19 = vector.broadcast %cst_14 : f32 to vector<48x128xf32>
    %20 = arith.maximumf %18, %19 : vector<48x128xf32>
    %21 = arith.truncf %20 : vector<48x128xf32> to vector<48x128xbf16>
    %cst_15 = arith.constant dense<0.000000e+00> : vector<1x128xf32>
    %22 = tpu.matmul %4, %21, %cst_15 {dimension_numbers = #tpu.dot_dimension_numbers<[1], [0], [0], [1], [0, 0, 1, 1], [], []>} : vector<1x48xbf16>, vector<48x128xbf16>, vector<1x128xf32> -> vector<1x128xf32>
    %23 = vector.broadcast %5 : vector<1x1xf32> to vector<1x128xf32>
    %24 = arith.addf %22, %23 : vector<1x128xf32>
    %c0_16 = arith.constant 0 : index
    %25 = arith.index_cast %7 : i32 to index
    %26 = vector.load %arg8[%c0_16, %25] : memref<1x128xf32, #tpu.memory_space<vmem>>, vector<1x128xf32>
    tpu.vector_store %arg8[%c0_16, %25], %24 {strides = array<i32>} : memref<1x128xf32, #tpu.memory_space<vmem>>, vector<1x128xf32>,
    %c1_i32 = arith.constant 1 : i32
    return
  }
  func.func @transform_0(%arg0: i32) -> (i32, i32) {
    %c0_i32 = arith.constant 0 : i32
    %c0_i32_0 = arith.constant 0 : i32
    return %c0_i32, %arg0 : i32, i32
  }
  func.func @transform_1(%arg0: i32) -> (i32, i32) {
    %c0_i32 = arith.constant 0 : i32
    %c0_i32_0 = arith.constant 0 : i32
    %c0_i32_1 = arith.constant 0 : i32
    return %c0_i32, %c0_i32_0 : i32, i32
  }
  func.func @transform_2(%arg0: i32) -> (i32, i32) {
    %c0_i32 = arith.constant 0 : i32
    %c0_i32_0 = arith.constant 0 : i32
    %c0_i32_1 = arith.constant 0 : i32
    return %c0_i32, %c0_i32_0 : i32, i32
  }
  func.func @transform_3(%arg0: i32) -> (i32, i32) {
    %c0_i32 = arith.constant 0 : i32
    %c0_i32_0 = arith.constant 0 : i32
    %c0_i32_1 = arith.constant 0 : i32
    return %c0_i32, %c0_i32_0 : i32, i32
  }
  func.func @transform_4(%arg0: i32) -> (i32, i32) {
    %c0_i32 = arith.constant 0 : i32
    %c0_i32_0 = arith.constant 0 : i32
    %c0_i32_1 = arith.constant 0 : i32
    return %c0_i32, %c0_i32_0 : i32, i32
  }
  func.func @transform_5(%arg0: i32) -> (i32, i32) {
    %c0_i32 = arith.constant 0 : i32
    %c0_i32_0 = arith.constant 0 : i32
    %c0_i32_1 = arith.constant 0 : i32
    return %c0_i32, %c0_i32_0 : i32, i32
  }
  func.func @transform_6(%arg0: i32) -> (i32, i32) {
    %c0_i32 = arith.constant 0 : i32
    %c0_i32_0 = arith.constant 0 : i32
    %c0_i32_1 = arith.constant 0 : i32
    return %c0_i32, %c0_i32_0 : i32, i32
  }
  func.func @transform_7(%arg0: i32) -> (i32, i32) {
    %c0_i32 = arith.constant 0 : i32
    %c0_i32_0 = arith.constant 0 : i32
    return %c0_i32, %arg0 : i32, i32
  }
}

</mosaic_0001>

<bundles_post_ra>
// kernel: reward_model_forward.1
= control target key start
LH: loop header
LB: loop body
LE: loop exit
PB: predicated region body
PF: predicated region fallthrough
CT: control target
= control target key end

     0   :  { %vm177_vm0 = vcmask 1041408   ;;  %vm158_vm1 = vcmask 31744   ;;  %v561_v1 = vmov 0   ;;  %v562_v29 = vmov 0.0   ;;  %s720_s0 = inlined_call_operand.vmem [shape: bf16[4,128], index: 0, kind: input, shape index: {}]   ;;  %s721_s1 = inlined_call_operand.vmem [shape: bf16[96,4], index: 1, kind: input, shape index: {}]   ;;  %s722_s6 = inlined_call_operand.<no memory space> [shape: f32[1,1], index: 6, kind: input, shape index: {}]   ;;  %s723_s2 = inlined_call_operand.vmem [shape: f32[96,1], index: 2, kind: input, shape index: {}]   ;;  %s724_s4 = inlined_call_operand.vmem [shape: f32[48,1], index: 4, kind: input, shape index: {}]   ;;  %s725_s3 = inlined_call_operand.vmem [shape: bf16[48,96], index: 3, kind: input, shape index: {}]   ;;  %s726_s5 = inlined_call_operand.vmem [shape: bf16[1,48], index: 5, kind: input, shape index: {}]   ;;  %s727_s7 = inlined_call_operand.vmem [shape: f32[1,128], index: 7, kind: output, shape index: {}]  }
   0x1   :  { %v67_v0 = vld [vmem:[%s720_s0] sm:$0x3]  ;;  %550 = vset.pattern.permute.xlu0 %v561_v1  ;;  %551 = vset.pattern.permute.xlu1 %v561_v1  ;;  %v12_v2 = vstv %s722_s6  ;;  %v553_v5 = vld [vmem:[%s721_s1 + $0x8] sm:$0xff]   ;;  %v554_v6 = vld [vmem:[%s721_s1 + $0x10] sm:$0xff]   ;;  %vm563_vm2 = vmmov 0   ;;  %vm325_vm3 = vcmask 785408  }
   0x2   :  { %546 = vmatprep.subr.msk.bf16.mxu0 %vm177_vm0, %v67_v0  ;;  %v179_v3 = vsel %vm177_vm0, %v67_v0, 0  ;;  %v552_v4 = vld [vmem:[%s721_s1] sm:$0xff]   ;;  %13 = vst [vmem:[#allocation2] sm:$0x1] %v12_v2  ;;  %v43_v8 = vld [vmem:[%s723_s2 + $0x10] sm:$0xff]  ;;  %v42_v9 = vld [vmem:[%s723_s2 + $0x8] sm:$0xff]  ;;  %512 = vmatprep.subr.bf16.mxu1 %v562_v29 }
   0x3   :  { %499 = vmatpush3.bf16.msra.mxu0 %v179_v3  ;;  %500 = vmatprep.mubr.msk.bf16.mxu0 %vm158_vm1, %v552_v4  ;;  %v41_v7 = vld [vmem:[%s723_s2] sm:$0xff]  ;;  %v555_v10 = vld [vmem:[%s721_s1 + $0x18] sm:$0xff]   ;;  %v46_v14 = vld [vmem:[%s723_s2 + $0x28] sm:$0xff]  ;;  %vm410_vm4 = vcmask 392192  }
   0x4   :  { %70 = vperm.xlu0 %550, %v41_v7   ;;  %80 = vperm.xlu1 %551, %v43_v8   ;;  %v44_v11 = vld [vmem:[%s723_s2 + $0x18] sm:$0xff]  ;;  %v556_v12 = vld [vmem:[%s721_s1 + $0x20] sm:$0xff]   ;;  %v47_v15 = vld [vmem:[%s723_s2 + $0x30] sm:$0xff] }
   0x5   :  { %v45_v13 = vld [vmem:[%s723_s2 + $0x20] sm:$0xff]  ;;  %v557_v16 = vld [vmem:[%s721_s1 + $0x28] sm:$0xff]   ;;  %v48_v17 = vld [vmem:[%s723_s2 + $0x38] sm:$0xff]  ;;  %536 = vmatprep.subr.bf16.mxu0 %v562_v29  ;;  %524 = vmatprep.mubr.msk.bf16.mxu1 %vm563_vm2, %v562_v29 }
   0x6   :  { %501 = vmatmul.mubr.msk.bf16.vlgmr.msra.gmra.mrb[0].mxu0 %vm158_vm1, %v553_v5  ;;  %v49_v18 = vld [vmem:[%s723_s2 + $0x40] sm:$0xff]  ;;  %v50_v19 = vld [vmem:[%s723_s2 + $0x48] sm:$0xff]  ;;  %v51_v20 = vld [vmem:[%s723_s2 + $0x50] sm:$0xff] }
   0x7   :  { %504 = vmatprep.mubr.msk.bf16.mxu0 %vm158_vm1, %v554_v6  ;;  %v52_v21 = vld [vmem:[%s723_s2 + $0x58] sm:$0xff]  ;;  %v59_v22 = vld [vmem:[%s724_s4] sm:$0xff]  ;;  %v60_v23 = vld [vmem:[%s724_s4 + $0x8] sm:$0xff] }
   0x8   :  { %75 = vperm.xlu0 %550, %v42_v9   ;;  %85 = vperm.xlu1 %551, %v44_v11   ;;  %v61_v24 = vld [vmem:[%s724_s4 + $0x10] sm:$0xff]  ;;  %v62_v25 = vld [vmem:[%s724_s4 + $0x18] sm:$0xff]  ;;  %v63_v26 = vld [vmem:[%s724_s4 + $0x20] sm:$0xff] }
   0x9   :  { %v64_v27 = vld [vmem:[%s724_s4 + $0x28] sm:$0xff]  ;;  %v66_v28 = vld [vmem:[#allocation2] sm:$0x1] }
   0xc   :  { %90 = vperm.xlu0 %550, %v45_v13   ;;  %95 = vperm.xlu1 %551, %v46_v14  }
   0xe   :  { %505 = vmatmul.mubr.msk.bf16.gmra.mrb[4].mxu0 %vm158_vm1, %v555_v10 }
   0xf   :  { %508 = vmatprep.mubr.msk.bf16.mxu0 %vm158_vm1, %v556_v12 }
  0x10   :  { %100 = vperm.xlu0 %550, %v47_v15   ;;  %105 = vperm.xlu1 %551, %v48_v17  }
  0x14   :  { %110 = vperm.xlu0 %550, %v49_v18   ;;  %115 = vperm.xlu1 %551, %v50_v19  }
  0x16   :  { %509 = vmatmul.mubr.msk.bf16.gmra.mrb[8].mxu0 %vm158_vm1, %v557_v16 }
  0x17   :  { %542 = vmatprep.mubr.msk.bf16.mxu0 %vm563_vm2, %v562_v29 }
  0x18   :  { %120 = vperm.xlu0 %550, %v51_v20   ;;  %125 = vperm.xlu1 %551, %v52_v21   ;;  %v558_v20 = vld [vmem:[%s725_s3] sm:$0xff]   ;;  %v559_v21 = vld [vmem:[%s725_s3 + $0x8] sm:$0xff]  }
  0x1c   :  { %282 = vperm.xlu0 %550, %v59_v22   ;;  %287 = vperm.xlu1 %551, %v60_v23   ;;  %v560_v22 = vld [vmem:[%s725_s3 + $0x10] sm:$0xff]  }
  0x20   :  { %292 = vperm.xlu0 %550, %v61_v24   ;;  %297 = vperm.xlu1 %551, %v62_v25  }
  0x24   :  { %302 = vperm.xlu0 %550, %v63_v26   ;;  %307 = vperm.xlu1 %551, %v64_v27  }
  0x28   :  { %403 = vperm.xlu0 %550, %v66_v28  }
  0x83   :  { %v71_v30 = vpop.permute.xlu0 %70  ;;  %v81_v31 = vpop.permute.xlu1 %80 }
  0x87   :  { %v76_v32 = vpop.permute.xlu0 %75  ;;  %v86_v33 = vpop.permute.xlu1 %85 }
  0x8b   :  { %v91_v34 = vpop.permute.xlu0 %90  ;;  %v96_v35 = vpop.permute.xlu1 %95 }
  0x8f   :  { %v101_v43 = vpop.permute.xlu0 %100  ;;  %v106_v47 = vpop.permute.xlu1 %105 }
  0x93   :  { %v111_v55 = vpop.permute.xlu0 %110  ;;  %v116_v60 = vpop.permute.xlu1 %115 }
  0x97   :  { %v121_v3 = vpop.permute.xlu0 %120  ;;  %v126_v8 = vpop.permute.xlu1 %125 }
  0x9b   :  { %v283_v23 = vpop.permute.xlu0 %282  ;;  %v288_v27 = vpop.permute.xlu1 %287 }
  0xd9   :  { %v502_v36 = vpop.f32.mrb[0].mxu0 }
  0xda   :  { %v224_v37 = vadd.f32 %v502_v36, %v81_v31  ;;  %v215_v38 = vpop.f32.mrb[1].mxu0 }
  0xdb   :  { %v216_v39 = vadd.f32 %v215_v38, %v71_v30  ;;  %v503_v40 = vpop.f32.mrb[2].mxu0 }
  0xdc   :  { %v227_v41 = vadd.f32 %v503_v40, %v86_v33  ;;  %v218_v42 = vpop.f32.mrb[3].mxu0  ;;  %v264_v45 = vmax.f32 %v224_v37, 0.0 }
  0xdd   :  { %v219_v44 = vadd.f32 %v218_v42, %v76_v32  ;;  %v262_v48 = vmax.f32 %v216_v39, 0.0  ;;  %v298_v39 = vpop.permute.xlu1 %297 }
  0xde   :  { %v265_v46 = vmax.f32 %v227_v41, 0.0 }
  0xdf   :  { %v263_v49 = vmax.f32 %v219_v44, 0.0 }
  0xe0   :  { %v275_v50 = vpack.c.bf16 %v265_v46, %v264_v45 }
  0xe1   :  { %v506_v51 = vpop.f32.mrb[4].mxu0  ;;  %v274_v52 = vpack.c.bf16 %v263_v49, %v262_v48 }
  0xe2   :  { %v240_v53 = vadd.f32 %v506_v51, %v101_v43  ;;  %v231_v54 = vpop.f32.mrb[5].mxu0 }
  0xe3   :  { %v232_v56 = vadd.f32 %v231_v54, %v91_v34  ;;  %v507_v57 = vpop.f32.mrb[6].mxu0  ;;  %513 = vmatpush3.bf16.msra.mxu1 %v274_v52 }
  0xe4   :  { %v243_v58 = vadd.f32 %v507_v57, %v106_v47  ;;  %v234_v59 = vpop.f32.mrb[7].mxu0  ;;  %514 = vmatprep.subr.bf16.mxu1 %v562_v29  ;;  %v268_v62 = vmax.f32 %v240_v53, 0.0  ;;  %v65_v57 = vld [vmem:[%s726_s5] sm:$0x1] }
  0xe5   :  { %v235_v61 = vadd.f32 %v234_v59, %v96_v35  ;;  %v266_v0 = vmax.f32 %v232_v56, 0.0  ;;  %v293_v35 = vpop.permute.xlu0 %292 }
  0xe6   :  { %v269_v63 = vmax.f32 %v243_v58, 0.0  ;;  %v406_v58 = vlaneseq }
  0xe7   :  { %v267_v1 = vmax.f32 %v235_v61, 0.0  ;;  %515 = vmatpush3.bf16.msra.mxu1 %v275_v50  ;;  %v308_v50 = vpop.permute.xlu1 %307 }
  0xe8   :  { %v277_v2 = vpack.c.bf16 %v269_v63, %v268_v62  ;;  %516 = vmatprep.subr.bf16.mxu1 %v562_v29  ;;  %v407_v59 = vshrl.u32 %v406_v58, 7 }
  0xe9   :  { %v276_v4 = vpack.c.bf16 %v267_v1, %v266_v0  ;;  %v510_v5 = vpop.f32.mrb[8].mxu0  ;;  %v303_v46 = vpop.permute.xlu0 %302 }
  0xea   :  { %v256_v6 = vadd.f32 %v510_v5, %v121_v3  ;;  %v247_v7 = vpop.f32.mrb[9].mxu0 }
  0xeb   :  { %v248_v9 = vadd.f32 %v247_v7, %v111_v55  ;;  %v511_v10 = vpop.f32.mrb[10].mxu0  ;;  %517 = vmatpush3.bf16.msra.mxu1 %v276_v4 }
  0xec   :  { %v259_v11 = vadd.f32 %v511_v10, %v126_v8  ;;  %v250_v12 = vpop.f32.mrb[11].mxu0  ;;  %518 = vmatprep.subr.bf16.mxu1 %v562_v29  ;;  %v272_v14 = vmax.f32 %v256_v6, 0.0 }
  0xed   :  { %v251_v13 = vadd.f32 %v250_v12, %v116_v60  ;;  %v270_v16 = vmax.f32 %v248_v9, 0.0  ;;  %v408_v60 = vsub.s32 0, %v407_v59  ;;  %v404_v61 = vpop.permute.xlu0 %403 }
  0xee   :  { %v273_v15 = vmax.f32 %v259_v11, 0.0 }
  0xef   :  { %v271_v17 = vmax.f32 %v251_v13, 0.0  ;;  %519 = vmatpush3.bf16.msra.mxu1 %v277_v2  ;;  %v409_v62 = vrot.slane %v404_v61, %v408_v60 }
  0xf0   :  { %v279_v18 = vpack.c.bf16 %v273_v15, %v272_v14  ;;  %520 = vmatprep.subr.bf16.mxu1 %v562_v29 }
  0xf1   :  { %v278_v19 = vpack.c.bf16 %v271_v17, %v270_v16 }
  0xf3   :  { %521 = vmatpush3.bf16.msra.mxu1 %v278_v19 }
  0xf4   :  { %522 = vmatprep.subr.bf16.mxu1 %v562_v29 }
  0xf7   :  { %523 = vmatpush3.bf16.msra.mxu1 %v279_v18 }
  0xfa   :  { %525 = vmatmul.mubr.msk.bf16.vlgmr.msra.gmra.mrb[0].mxu1 %vm325_vm3, %v558_v20 }
  0xfb   :  { %528 = vmatprep.mubr.msk.bf16.mxu1 %vm563_vm2, %v562_v29 }
 0x102   :  { %529 = vmatmul.mubr.msk.bf16.gmra.mrb[4].mxu1 %vm325_vm3, %v559_v21 }
 0x103   :  { %532 = vmatprep.mubr.msk.bf16.mxu1 %vm563_vm2, %v562_v29 }
 0x10a   :  { %533 = vmatmul.mubr.msk.bf16.gmra.mrb[8].mxu1 %vm325_vm3, %v560_v22 }
 0x1cd   :  { %v369_v24 = vpop.f32.mrb[0].mxu1 }
 0x1ce   :  { %v370_v25 = vadd.f32 %v369_v24, %v283_v23  ;;  %v526_v26 = vpop.f32.mrb[1].mxu1 }
 0x1cf   :  { %v372_v28 = vpop.f32.mrb[2].mxu1 }
 0x1d0   :  { %v373_v30 = vadd.f32 %v372_v28, %v288_v27  ;;  %v527_v31 = vpop.f32.mrb[3].mxu1  ;;  %v392_v32 = vmax.f32 %v370_v25, 0.0 }
 0x1d2   :  { %v393_v33 = vmax.f32 %v373_v30, 0.0 }
 0x1d4   :  { %v398_v34 = vpack.c.bf16 %v393_v33, %v392_v32 }
 0x1d5   :  { %v377_v36 = vpop.f32.mrb[4].mxu1 }
 0x1d6   :  { %v378_v37 = vadd.f32 %v377_v36, %v293_v35  ;;  %v530_v38 = vpop.f32.mrb[5].mxu1  ;;  %537 = vmatpush3.bf16.msra.mxu0 %v398_v34 }
 0x1d7   :  { %v380_v40 = vpop.f32.mrb[6].mxu1  ;;  %538 = vmatprep.subr.bf16.mxu0 %v562_v29 }
 0x1d8   :  { %v381_v41 = vadd.f32 %v380_v40, %v298_v39  ;;  %v531_v42 = vpop.f32.mrb[7].mxu1  ;;  %v394_v43 = vmax.f32 %v378_v37, 0.0 }
 0x1da   :  { %v395_v44 = vmax.f32 %v381_v41, 0.0 }
 0x1dc   :  { %v399_v45 = vpack.c.bf16 %v395_v44, %v394_v43 }
 0x1dd   :  { %v385_v47 = vpop.f32.mrb[8].mxu1 }
 0x1de   :  { %v386_v48 = vadd.f32 %v385_v47, %v303_v46  ;;  %v534_v49 = vpop.f32.mrb[9].mxu1  ;;  %539 = vmatpush3.bf16.msra.mxu0 %v399_v45 }
 0x1df   :  { %v388_v51 = vpop.f32.mrb[10].mxu1  ;;  %540 = vmatprep.subr.bf16.mxu0 %v562_v29 }
 0x1e0   :  { %v389_v52 = vadd.f32 %v388_v51, %v308_v50  ;;  %v535_v53 = vpop.f32.mrb[11].mxu1  ;;  %v396_v54 = vmax.f32 %v386_v48, 0.0 }
 0x1e2   :  { %v397_v55 = vmax.f32 %v389_v52, 0.0 }
 0x1e4   :  { %v400_v56 = vpack.c.bf16 %v397_v55, %v396_v54 }
 0x1e6   :  { %541 = vmatpush3.bf16.msra.mxu0 %v400_v56 }
 0x1e9   :  { %543 = vmatmul.mubr.msk.bf16.vlgmr.msra.gmra.mrb[12].mxu0 %vm410_vm4, %v65_v57 }
 0x2bc   :  { %v448_v63 = vpop.f32.mrb[12].mxu0 }
 0x2bd   :  { %v449_v0 = vadd.f32 %v448_v63, %v409_v62  ;;  %v544_v29 = vpop.f32.mrb[13].mxu0 }
 0x2be   :  { %v451_v1 = vpop.f32.mrb[14].mxu0 }
 0x2bf   :  { %454 = vst [vmem:[%s727_s7] sm:$0x1] %v449_v0  ;;  %v545_v2 = vpop.f32.mrb[15].mxu0 }

</bundles_post_ra>
